<compile_context>
chip_gen: v7x
topology: tpu7x:2x2x1
jax: 0.10.0
libtpu: 0.0.40
codegen_flags: <defaults>
</compile_context>

<pallas_src>
import functools

import numpy as np
import jax
import jax.numpy as jnp
from jax import lax
from jax.experimental import pallas as pl
from jax.experimental.pallas import tpu as pltpu


# ----------------------------------------------------------------------------
# Shared math (pure jnp): used both inside the Pallas kernel and by the
# pure-JAX reference so the two trace identical ops.
# ----------------------------------------------------------------------------
def _leaky_relu(x, slope=0.1):
    return jnp.where(x >= 0, x, slope * x)


def _project_simplex_pairs(y):
    """Euclidean projection of each player's 3-wide block of y (B, 6) onto the
    probability simplex, via a closed-form 3-element min/max sort network.
    Pure VPU work (compares / min / max / select): no rank-3 intermediates,
    no per-iteration cross-lane XLU reductions."""
    two_a = y.shape[1]
    assert two_a == 6, "closed-form projection is specialized to action_size=3"

    def _tau3(blk):                      # blk: (B, 3) -> per-row threshold (B, 1)
        a = blk[:, 0:1]
        b = blk[:, 1:2]
        c = blk[:, 2:3]
        hi = jnp.maximum(a, b)
        lo = jnp.minimum(a, b)
        v1 = jnp.maximum(hi, c)                      # max
        v3 = jnp.minimum(lo, c)                      # min
        v2 = jnp.maximum(lo, jnp.minimum(hi, c))     # median
        t1 = v1 - 1.0
        t2 = 0.5 * (v1 + v2 - 1.0)
        t3 = (v1 + v2 + v3 - 1.0) * (1.0 / 3.0)
        # rho = 3 iff v3 > t3, else rho = 2 iff v2 > t2, else rho = 1.
        return jnp.where(v3 > t3, t3, jnp.where(v2 > t2, t2, t1))

    tau_l = _tau3(y[:, 0:3])             # (B, 1) threshold for player 1 block
    tau_r = _tau3(y[:, 3:6])             # (B, 1) threshold for player 2 block
    col = lax.broadcasted_iota(jnp.int32, (1, two_a), 1)
    tau = jnp.where(col < 3, tau_l, tau_r)           # (B, 6) per-column threshold
    return jnp.maximum(y - tau, 0.0)


def _forward_math(d, w1t, b1, w_eff, mt_ls, *, eps, max_depth, training):
    """Whole CoCo_NFPN_RPS_Net forward (shared by kernel and reference)."""
    # data_space_forward: LeakyReLU(0.1)(d @ W1^T + b1)
    qd = _leaky_relu(jnp.dot(d, w1t, preferred_element_type=jnp.float32) + b1)
    # loop-invariant constant term: latent_step_size * (Qd @ M^T)
    qd_const = jnp.dot(qd, mt_ls, preferred_element_type=jnp.float32)

    u0 = jnp.full_like(qd, 1.0 / 3.0)
    eps_sq = jnp.float32(eps) * jnp.float32(eps)

    def step(z1):
        # z1 - ls*(z1 - (z1+Qd) @ M^T)  ==  z1 @ W_eff + Qd_const   (hoisted)
        y = jnp.dot(z1, w_eff, preferred_element_type=jnp.float32) + qd_const
        return _project_simplex_pairs(y)

    def cond(carry):
        _, depth, res_sq = carry
        return jnp.logical_and(depth < max_depth, res_sq > eps_sq)

    def body(carry):
        u, depth, _ = carry
        u_new = step(u)
        diff = u_new - u
        # max-over-batch of squared L2 residual (sqrt dropped: compare vs eps^2)
        res_sq = jnp.max(jnp.sum(diff * diff, axis=1, keepdims=True))
        return (u_new, depth + jnp.int32(1), res_sq)

    u, _, _ = lax.while_loop(
        cond, body,
        (u0, jnp.int32(0), jnp.asarray(np.inf, dtype=jnp.float32)))

    if training:
        # nn.Module defaults to training=True: one extra (gradient-attached in
        # torch) latent step; map_latent_to_inference is the identity.
        u = step(u)
    return u


# ----------------------------------------------------------------------------
# Pallas kernel: whole forward_implicit for the full (small) batch in VMEM.
# (B=8, 6 features -> total working set is a few KiB; no grid needed.  A batch
#  grid with dimension_semantics=("parallel",) would only pay off for very
#  large B and would change the global-over-batch convergence gate.)
# ----------------------------------------------------------------------------
def _nfpn_kernel(d_ref, w1t_ref, b1_ref, w_eff_ref, mt_ls_ref, out_ref, *,
                 eps, max_depth, training):
    out_ref[...] = _forward_math(
        d_ref[...], w1t_ref[...], b1_ref[...], w_eff_ref[...], mt_ls_ref[...],
        eps=eps, max_depth=max_depth, training=training)


# ----------------------------------------------------------------------------
# Parameter plumbing shared by kernel wrapper and reference.
# ----------------------------------------------------------------------------
def _prepare_params(w1, b1, a_mono, *, action_size, monotone_gamma,
                    latent_step_size):
    two_a = 2 * action_size
    ls = float(latent_step_size)
    w1t = jnp.asarray(w1, jnp.float32).T                      # (context, 2A)
    b1_2d = jnp.asarray(b1, jnp.float32).reshape(1, two_a)
    a_mono = jnp.asarray(a_mono, jnp.float32)
    # TODO(synk): exact LinearMonotoneLayer source was not provided; we use the
    # standard monotone parameterization M = gamma*I + (A - A^T), applied x@M^T.
    m = monotone_gamma * jnp.eye(two_a, dtype=jnp.float32) + (a_mono - a_mono.T)
    mt = m.T
    eye = jnp.eye(two_a, dtype=jnp.float32)
    w_eff = (1.0 - ls) * eye + ls * mt                        # (2A, 2A)
    mt_ls = ls * mt                                           # (2A, 2A)
    return w1t, b1_2d, w_eff, mt_ls


def coco_nfpn_rps_forward(d, w1, b1, a_mono, *, action_size=3,
                          monotone_gamma=0.5, latent_step_size=0.5,
                          eps=1e-5, max_depth=100, training=True):
    assert action_size == 3, "kernel specialized to RPS (action_size=3)"
    d = jnp.asarray(d, jnp.float32)
    B = d.shape[0]
    two_a = 2 * action_size
    w1t, b1_2d, w_eff, mt_ls = _prepare_params(
        w1, b1, a_mono, action_size=action_size,
        monotone_gamma=monotone_gamma, latent_step_size=latent_step_size)

    kernel = functools.partial(
        _nfpn_kernel, eps=float(eps), max_depth=int(max_depth),
        training=bool(training))

    vmem = pl.BlockSpec(memory_space=pltpu.MemorySpace.VMEM)
    return pl.pallas_call(
        kernel,
        out_shape=jax.ShapeDtypeStruct((B, two_a), jnp.float32),
        in_specs=[vmem, vmem, vmem, vmem, vmem],
        out_specs=vmem,
    )(d, w1t, b1_2d, w_eff, mt_ls)


# ----------------------------------------------------------------------------
# Pure-JAX reference (same math, no Pallas) for a correctness check.
# ----------------------------------------------------------------------------
def coco_nfpn_rps_reference(d, w1, b1, a_mono, *, action_size=3,
                            monotone_gamma=0.5, latent_step_size=0.5,
                            eps=1e-5, max_depth=100, training=True):
    d = jnp.asarray(d, jnp.float32)
    w1t, b1_2d, w_eff, mt_ls = _prepare_params(
        w1, b1, a_mono, action_size=action_size,
        monotone_gamma=monotone_gamma, latent_step_size=latent_step_size)
    return _forward_math(d, w1t, b1_2d, w_eff, mt_ls,
                         eps=float(eps), max_depth=int(max_depth),
                         training=bool(training))


# ----------------------------------------------------------------------------
if __name__ == "__main__":
    key = jax.random.PRNGKey(0)
    k_d, k_w1, k_b1, k_a = jax.random.split(key, 4)

    batch = 8
    action_size = 3          # rock / paper / scissors
    context_size = 3
    two_a = 2 * action_size

    # inputs
    d = jax.random.normal(k_d, (batch, context_size), jnp.float32)

    # deterministic parameter init (shapes match the torch module's __init__)
    bound = 1.0 / np.sqrt(context_size)
    w1 = jax.random.uniform(k_w1, (two_a, context_size), jnp.float32, -bound, bound)
    b1 = jax.random.uniform(k_b1, (two_a,), jnp.float32, -bound, bound)
    a_mono = 0.1 * jax.random.normal(k_a, (two_a, two_a), jnp.float32)

    out = coco_nfpn_rps_forward(
        d, w1, b1, a_mono,
        action_size=action_size, monotone_gamma=0.5,
        latent_step_size=0.5, eps=1e-5, max_depth=100, training=True)
    out = jax.block_until_ready(out)

    ref = coco_nfpn_rps_reference(
        d, w1, b1, a_mono,
        action_size=action_size, monotone_gamma=0.5,
        latent_step_size=0.5, eps=1e-5, max_depth=100, training=True)
    ref = jax.block_until_ready(ref)

    np.testing.assert_allclose(np.asarray(out), np.asarray(ref),
                               atol=1e-4, rtol=1e-4)
    print("KERNEL_OK")
</pallas_src>

<mosaic_0001>
module attributes {stable_mosaic.version = 11 : i64} {
  func.func @_nfpn_kernel(%arg0: memref<8x3xf32, #tpu.memory_space<vmem>>, %arg1: memref<3x6xf32, #tpu.memory_space<vmem>>, %arg2: memref<1x6xf32, #tpu.memory_space<vmem>>, %arg3: memref<6x6xf32, #tpu.memory_space<vmem>>, %arg4: memref<6x6xf32, #tpu.memory_space<vmem>>, %arg5: memref<8x6xf32, #tpu.memory_space<vmem>>) attributes {dimension_semantics = [], scalar_prefetch = 0 : i64, scratch_operands = 0 : i64, tpu.core_type = #tpu.core_type<tc>} {
    %c0 = arith.constant 0 : index
    %c0_0 = arith.constant 0 : index
    %0 = vector.load %arg0[%c0, %c0_0] : memref<8x3xf32, #tpu.memory_space<vmem>>, vector<8x3xf32>
    %c0_1 = arith.constant 0 : index
    %c0_2 = arith.constant 0 : index
    %1 = vector.load %arg1[%c0_1, %c0_2] : memref<3x6xf32, #tpu.memory_space<vmem>>, vector<3x6xf32>
    %c0_3 = arith.constant 0 : index
    %c0_4 = arith.constant 0 : index
    %2 = vector.load %arg2[%c0_3, %c0_4] : memref<1x6xf32, #tpu.memory_space<vmem>>, vector<1x6xf32>
    %c0_5 = arith.constant 0 : index
    %c0_6 = arith.constant 0 : index
    %3 = vector.load %arg3[%c0_5, %c0_6] : memref<6x6xf32, #tpu.memory_space<vmem>>, vector<6x6xf32>
    %c0_7 = arith.constant 0 : index
    %c0_8 = arith.constant 0 : index
    %4 = vector.load %arg4[%c0_7, %c0_8] : memref<6x6xf32, #tpu.memory_space<vmem>>, vector<6x6xf32>
    %cst = arith.constant dense<0.000000e+00> : vector<8x6xf32>
    %5 = tpu.matmul %0, %1, %cst {dimension_numbers = #tpu.dot_dimension_numbers<[1], [0], [0], [1], [0, 0, 1, 1], [], []>} : vector<8x3xf32>, vector<3x6xf32>, vector<8x6xf32> -> vector<8x6xf32>
    %6 = vector.broadcast %2 : vector<1x6xf32> to vector<8x6xf32>
    %7 = arith.addf %5, %6 : vector<8x6xf32>
    %cst_9 = arith.constant 0.000000e+00 : f32
    %8 = vector.broadcast %cst_9 : f32 to vector<8x6xf32>
    %9 = arith.cmpf oge, %7, %8 : vector<8x6xf32>
    %cst_10 = arith.constant 1.000000e-01 : f32
    %10 = vector.broadcast %cst_10 : f32 to vector<8x6xf32>
    %11 = arith.mulf %10, %7 : vector<8x6xf32>
    %12 = arith.select %9, %7, %11 : vector<8x6xi1>, vector<8x6xf32>
    %cst_11 = arith.constant dense<0.000000e+00> : vector<8x6xf32>
    %13 = tpu.matmul %12, %4, %cst_11 {dimension_numbers = #tpu.dot_dimension_numbers<[1], [0], [0], [1], [0, 0, 1, 1], [], []>} : vector<8x6xf32>, vector<6x6xf32>, vector<8x6xf32> -> vector<8x6xf32>
    %cst_12 = arith.constant 0.333333343 : f32
    %14 = vector.broadcast %cst_12 : f32 to vector<8x6xf32>
    %cst_13 = arith.constant 9.99999974E-6 : f32
    %cst_14 = arith.constant 9.99999974E-6 : f32
    %15 = arith.mulf %cst_13, %cst_14 : f32
    %c0_i32 = arith.constant 0 : i32
    %cst_15 = arith.constant 0x7F800000 : f32
    %16:3 = scf.while (%arg6 = %14, %arg7 = %c0_i32, %arg8 = %cst_15) : (vector<8x6xf32>, i32, f32) -> (vector<8x6xf32>, i32, f32) {
      %c100_i32 = arith.constant 100 : i32
      %87 = arith.cmpi slt, %arg7, %c100_i32 : i32
      %88 = arith.cmpf ogt, %arg8, %15 : f32
      %89 = arith.andi %87, %88 : i1
      scf.condition(%89) %arg6, %arg7, %arg8 : vector<8x6xf32>, i32, f32
    } do {
    ^bb0(%arg6: vector<8x6xf32>, %arg7: i32, %arg8: f32):
      %cst_30 = arith.constant dense<0.000000e+00> : vector<8x6xf32>
      %87 = tpu.matmul %arg6, %3, %cst_30 {dimension_numbers = #tpu.dot_dimension_numbers<[1], [0], [0], [1], [0, 0, 1, 1], [], []>} : vector<8x6xf32>, vector<6x6xf32>, vector<8x6xf32> -> vector<8x6xf32>
      %88 = arith.addf %87, %13 : vector<8x6xf32>
      %89 = vector.extract_strided_slice %88 {offsets = [0, 0], sizes = [8, 3], strides = [1, 1]} : vector<8x6xf32> to vector<8x3xf32>
      %90 = vector.extract_strided_slice %89 {offsets = [0, 0], sizes = [8, 1], strides = [1, 1]} : vector<8x3xf32> to vector<8x1xf32>
      %91 = vector.extract_strided_slice %89 {offsets = [0, 1], sizes = [8, 1], strides = [1, 1]} : vector<8x3xf32> to vector<8x1xf32>
      %92 = vector.extract_strided_slice %89 {offsets = [0, 2], sizes = [8, 1], strides = [1, 1]} : vector<8x3xf32> to vector<8x1xf32>
      %93 = arith.maximumf %90, %91 : vector<8x1xf32>
      %94 = arith.minimumf %90, %91 : vector<8x1xf32>
      %95 = arith.maximumf %93, %92 : vector<8x1xf32>
      %96 = arith.minimumf %94, %92 : vector<8x1xf32>
      %97 = arith.minimumf %93, %92 : vector<8x1xf32>
      %98 = arith.maximumf %94, %97 : vector<8x1xf32>
      %cst_31 = arith.constant 1.000000e+00 : f32
      %99 = vector.broadcast %cst_31 : f32 to vector<8x1xf32>
      %100 = arith.subf %95, %99 : vector<8x1xf32>
      %101 = arith.addf %95, %98 : vector<8x1xf32>
      %cst_32 = arith.constant 1.000000e+00 : f32
      %102 = vector.broadcast %cst_32 : f32 to vector<8x1xf32>
      %103 = arith.subf %101, %102 : vector<8x1xf32>
      %cst_33 = arith.constant 5.000000e-01 : f32
      %104 = vector.broadcast %cst_33 : f32 to vector<8x1xf32>
      %105 = arith.mulf %104, %103 : vector<8x1xf32>
      %106 = arith.addf %95, %98 : vector<8x1xf32>
      %107 = arith.addf %106, %96 : vector<8x1xf32>
      %cst_34 = arith.constant 1.000000e+00 : f32
      %108 = vector.broadcast %cst_34 : f32 to vector<8x1xf32>
      %109 = arith.subf %107, %108 : vector<8x1xf32>
      %cst_35 = arith.constant 0.333333343 : f32
      %110 = vector.broadcast %cst_35 : f32 to vector<8x1xf32>
      %111 = arith.mulf %109, %110 : vector<8x1xf32>
      %112 = arith.cmpf ogt, %96, %111 : vector<8x1xf32>
      %113 = arith.cmpf ogt, %98, %105 : vector<8x1xf32>
      %114 = arith.select %113, %105, %100 : vector<8x1xi1>, vector<8x1xf32>
      %115 = arith.select %112, %111, %114 : vector<8x1xi1>, vector<8x1xf32>
      %116 = vector.extract_strided_slice %88 {offsets = [0, 3], sizes = [8, 3], strides = [1, 1]} : vector<8x6xf32> to vector<8x3xf32>
      %117 = vector.extract_strided_slice %116 {offsets = [0, 0], sizes = [8, 1], strides = [1, 1]} : vector<8x3xf32> to vector<8x1xf32>
      %118 = vector.extract_strided_slice %116 {offsets = [0, 1], sizes = [8, 1], strides = [1, 1]} : vector<8x3xf32> to vector<8x1xf32>
      %119 = vector.extract_strided_slice %116 {offsets = [0, 2], sizes = [8, 1], strides = [1, 1]} : vector<8x3xf32> to vector<8x1xf32>
      %120 = arith.maximumf %117, %118 : vector<8x1xf32>
      %121 = arith.minimumf %117, %118 : vector<8x1xf32>
      %122 = arith.maximumf %120, %119 : vector<8x1xf32>
      %123 = arith.minimumf %121, %119 : vector<8x1xf32>
      %124 = arith.minimumf %120, %119 : vector<8x1xf32>
      %125 = arith.maximumf %121, %124 : vector<8x1xf32>
      %cst_36 = arith.constant 1.000000e+00 : f32
      %126 = vector.broadcast %cst_36 : f32 to vector<8x1xf32>
      %127 = arith.subf %122, %126 : vector<8x1xf32>
      %128 = arith.addf %122, %125 : vector<8x1xf32>
      %cst_37 = arith.constant 1.000000e+00 : f32
      %129 = vector.broadcast %cst_37 : f32 to vector<8x1xf32>
      %130 = arith.subf %128, %129 : vector<8x1xf32>
      %cst_38 = arith.constant 5.000000e-01 : f32
      %131 = vector.broadcast %cst_38 : f32 to vector<8x1xf32>
      %132 = arith.mulf %131, %130 : vector<8x1xf32>
      %133 = arith.addf %122, %125 : vector<8x1xf32>
      %134 = arith.addf %133, %123 : vector<8x1xf32>
      %cst_39 = arith.constant 1.000000e+00 : f32
      %135 = vector.broadcast %cst_39 : f32 to vector<8x1xf32>
      %136 = arith.subf %134, %135 : vector<8x1xf32>
      %cst_40 = arith.constant 0.333333343 : f32
      %137 = vector.broadcast %cst_40 : f32 to vector<8x1xf32>
      %138 = arith.mulf %136, %137 : vector<8x1xf32>
      %139 = arith.cmpf ogt, %123, %138 : vector<8x1xf32>
      %140 = arith.cmpf ogt, %125, %132 : vector<8x1xf32>
      %141 = arith.select %140, %132, %127 : vector<8x1xi1>, vector<8x1xf32>
      %142 = arith.select %139, %138, %141 : vector<8x1xi1>, vector<8x1xf32>
      %143 = tpu.iota {dimensions = array<i32: 1>} : vector<1x6xi32>
      %c3_i32_41 = arith.constant 3 : i32
      %144 = vector.broadcast %c3_i32_41 : i32 to vector<1x6xi32>
      %145 = arith.cmpi slt, %143, %144 : vector<1x6xi32>
      %146 = vector.shape_cast %145 : vector<1x6xi1> to vector<1x6xi1>
      %147 = vector.broadcast %146 : vector<1x6xi1> to vector<8x6xi1>
      %148 = vector.shape_cast %115 : vector<8x1xf32> to vector<8x1xf32>
      %149 = vector.broadcast %148 : vector<8x1xf32> to vector<8x6xf32>
      %150 = vector.shape_cast %142 : vector<8x1xf32> to vector<8x1xf32>
      %151 = vector.broadcast %150 : vector<8x1xf32> to vector<8x6xf32>
      %152 = arith.select %147, %149, %151 : vector<8x6xi1>, vector<8x6xf32>
      %153 = arith.subf %88, %152 : vector<8x6xf32>
      %cst_42 = arith.constant 0.000000e+00 : f32
      %154 = vector.broadcast %cst_42 : f32 to vector<8x6xf32>
      %155 = arith.maximumf %153, %154 : vector<8x6xf32>
      %156 = arith.subf %155, %arg6 : vector<8x6xf32>
      %157 = arith.mulf %156, %156 : vector<8x6xf32>
      %cst_43 = arith.constant dense<0.000000e+00> : vector<8xf32>
      %158 = vector.multi_reduction <add>, %157, %cst_43 [1] : vector<8x6xf32> to vector<8xf32>
      %159 = vector.shape_cast %158 : vector<8xf32> to vector<8x1xf32>
      %160 = vector.shape_cast %159 : vector<8x1xf32> to vector<1x8x1xf32>
      %cst_44 = arith.constant dense<0xFF800000> : vector<1xf32>
      %161 = vector.multi_reduction <maximumf>, %160, %cst_44 [1, 2] : vector<1x8x1xf32> to vector<1xf32>
      %162 = vector.shape_cast %161 : vector<1xf32> to vector<1x1x1xf32>
      %163 = vector.extract %162[0, 0, 0] : f32 from vector<1x1x1xf32>
      %c1_i32 = arith.constant 1 : i32
      %164 = arith.addi %arg7, %c1_i32 : i32
      scf.yield %155, %164, %163 : vector<8x6xf32>, i32, f32
    }
    %cst_16 = arith.constant dense<0.000000e+00> : vector<8x6xf32>
    %17 = tpu.matmul %16#0, %3, %cst_16 {dimension_numbers = #tpu.dot_dimension_numbers<[1], [0], [0], [1], [0, 0, 1, 1], [], []>} : vector<8x6xf32>, vector<6x6xf32>, vector<8x6xf32> -> vector<8x6xf32>
    %18 = arith.addf %17, %13 : vector<8x6xf32>
    %19 = vector.extract_strided_slice %18 {offsets = [0, 0], sizes = [8, 3], strides = [1, 1]} : vector<8x6xf32> to vector<8x3xf32>
    %20 = vector.extract_strided_slice %19 {offsets = [0, 0], sizes = [8, 1], strides = [1, 1]} : vector<8x3xf32> to vector<8x1xf32>
    %21 = vector.extract_strided_slice %19 {offsets = [0, 1], sizes = [8, 1], strides = [1, 1]} : vector<8x3xf32> to vector<8x1xf32>
    %22 = vector.extract_strided_slice %19 {offsets = [0, 2], sizes = [8, 1], strides = [1, 1]} : vector<8x3xf32> to vector<8x1xf32>
    %23 = arith.maximumf %20, %21 : vector<8x1xf32>
    %24 = arith.minimumf %20, %21 : vector<8x1xf32>
    %25 = arith.maximumf %23, %22 : vector<8x1xf32>
    %26 = arith.minimumf %24, %22 : vector<8x1xf32>
    %27 = arith.minimumf %23, %22 : vector<8x1xf32>
    %28 = arith.maximumf %24, %27 : vector<8x1xf32>
    %cst_17 = arith.constant 1.000000e+00 : f32
    %29 = vector.broadcast %cst_17 : f32 to vector<8x1xf32>
    %30 = arith.subf %25, %29 : vector<8x1xf32>
    %31 = arith.addf %25, %28 : vector<8x1xf32>
    %cst_18 = arith.constant 1.000000e+00 : f32
    %32 = vector.broadcast %cst_18 : f32 to vector<8x1xf32>
    %33 = arith.subf %31, %32 : vector<8x1xf32>
    %cst_19 = arith.constant 5.000000e-01 : f32
    %34 = vector.broadcast %cst_19 : f32 to vector<8x1xf32>
    %35 = arith.mulf %34, %33 : vector<8x1xf32>
    %36 = arith.addf %25, %28 : vector<8x1xf32>
    %37 = arith.addf %36, %26 : vector<8x1xf32>
    %cst_20 = arith.constant 1.000000e+00 : f32
    %38 = vector.broadcast %cst_20 : f32 to vector<8x1xf32>
    %39 = arith.subf %37, %38 : vector<8x1xf32>
    %cst_21 = arith.constant 0.333333343 : f32
    %40 = vector.broadcast %cst_21 : f32 to vector<8x1xf32>
    %41 = arith.mulf %39, %40 : vector<8x1xf32>
    %42 = arith.cmpf ogt, %26, %41 : vector<8x1xf32>
    %43 = arith.cmpf ogt, %28, %35 : vector<8x1xf32>
    %44 = arith.select %43, %35, %30 : vector<8x1xi1>, vector<8x1xf32>
    %45 = arith.select %42, %41, %44 : vector<8x1xi1>, vector<8x1xf32>
    %46 = vector.extract_strided_slice %18 {offsets = [0, 3], sizes = [8, 3], strides = [1, 1]} : vector<8x6xf32> to vector<8x3xf32>
    %47 = vector.extract_strided_slice %46 {offsets = [0, 0], sizes = [8, 1], strides = [1, 1]} : vector<8x3xf32> to vector<8x1xf32>
    %48 = vector.extract_strided_slice %46 {offsets = [0, 1], sizes = [8, 1], strides = [1, 1]} : vector<8x3xf32> to vector<8x1xf32>
    %49 = vector.extract_strided_slice %46 {offsets = [0, 2], sizes = [8, 1], strides = [1, 1]} : vector<8x3xf32> to vector<8x1xf32>
    %50 = arith.maximumf %47, %48 : vector<8x1xf32>
    %51 = arith.minimumf %47, %48 : vector<8x1xf32>
    %52 = arith.maximumf %50, %49 : vector<8x1xf32>
    %53 = arith.minimumf %51, %49 : vector<8x1xf32>
    %54 = arith.minimumf %50, %49 : vector<8x1xf32>
    %55 = arith.maximumf %51, %54 : vector<8x1xf32>
    %cst_22 = arith.constant 1.000000e+00 : f32
    %56 = vector.broadcast %cst_22 : f32 to vector<8x1xf32>
    %57 = arith.subf %52, %56 : vector<8x1xf32>
    %58 = arith.addf %52, %55 : vector<8x1xf32>
    %cst_23 = arith.constant 1.000000e+00 : f32
    %59 = vector.broadcast %cst_23 : f32 to vector<8x1xf32>
    %60 = arith.subf %58, %59 : vector<8x1xf32>
    %cst_24 = arith.constant 5.000000e-01 : f32
    %61 = vector.broadcast %cst_24 : f32 to vector<8x1xf32>
    %62 = arith.mulf %61, %60 : vector<8x1xf32>
    %63 = arith.addf %52, %55 : vector<8x1xf32>
    %64 = arith.addf %63, %53 : vector<8x1xf32>
    %cst_25 = arith.constant 1.000000e+00 : f32
    %65 = vector.broadcast %cst_25 : f32 to vector<8x1xf32>
    %66 = arith.subf %64, %65 : vector<8x1xf32>
    %cst_26 = arith.constant 0.333333343 : f32
    %67 = vector.broadcast %cst_26 : f32 to vector<8x1xf32>
    %68 = arith.mulf %66, %67 : vector<8x1xf32>
    %69 = arith.cmpf ogt, %53, %68 : vector<8x1xf32>
    %70 = arith.cmpf ogt, %55, %62 : vector<8x1xf32>
    %71 = arith.select %70, %62, %57 : vector<8x1xi1>, vector<8x1xf32>
    %72 = arith.select %69, %68, %71 : vector<8x1xi1>, vector<8x1xf32>
    %73 = tpu.iota {dimensions = array<i32: 1>} : vector<1x6xi32>
    %c3_i32 = arith.constant 3 : i32
    %74 = vector.broadcast %c3_i32 : i32 to vector<1x6xi32>
    %75 = arith.cmpi slt, %73, %74 : vector<1x6xi32>
    %76 = vector.shape_cast %75 : vector<1x6xi1> to vector<1x6xi1>
    %77 = vector.broadcast %76 : vector<1x6xi1> to vector<8x6xi1>
    %78 = vector.shape_cast %45 : vector<8x1xf32> to vector<8x1xf32>
    %79 = vector.broadcast %78 : vector<8x1xf32> to vector<8x6xf32>
    %80 = vector.shape_cast %72 : vector<8x1xf32> to vector<8x1xf32>
    %81 = vector.broadcast %80 : vector<8x1xf32> to vector<8x6xf32>
    %82 = arith.select %77, %79, %81 : vector<8x6xi1>, vector<8x6xf32>
    %83 = arith.subf %18, %82 : vector<8x6xf32>
    %cst_27 = arith.constant 0.000000e+00 : f32
    %84 = vector.broadcast %cst_27 : f32 to vector<8x6xf32>
    %85 = arith.maximumf %83, %84 : vector<8x6xf32>
    %c0_28 = arith.constant 0 : index
    %c0_29 = arith.constant 0 : index
    %86 = vector.load %arg5[%c0_28, %c0_29] : memref<8x6xf32, #tpu.memory_space<vmem>>, vector<8x6xf32>
    tpu.vector_store %arg5[%c0_28, %c0_29], %85 {strides = array<i32>} : memref<8x6xf32, #tpu.memory_space<vmem>>, vector<8x6xf32>,
    return
  }
}

</mosaic_0001>

<bundles_post_ra>
// kernel: tpu_custom_call.1
= control target key start
LH: loop header
LB: loop body
LE: loop exit
PB: predicated region body
PF: predicated region fallthrough
CT: control target
= control target key end

     0   :  { %10 = vsyncpa [#allocation3], 0  ;;  %s757_s0 = inlined_call_operand.vmem [shape: f32[8,3], index: 0, kind: input, shape index: {}]   ;;  %s758_s1 = inlined_call_operand.hbm [shape: f32[3,6], index: 1, kind: input, shape index: {}]   ;;  %s759_s2 = inlined_call_operand.vmem [shape: f32[1,6], index: 2, kind: input, shape index: {}]   ;;  %s760_s3 = inlined_call_operand.vmem [shape: f32[6,6], index: 3, kind: input, shape index: {}]   ;;  %s761_s4 = inlined_call_operand.vmem [shape: f32[6,6], index: 4, kind: input, shape index: {}]   ;;  %s762_s5 = inlined_call_operand.hbm [shape: f32[8,6], index: 5, kind: output, shape index: {}]  }
   0x1   :  { %11 = vsyncpa [#allocation4], 0  ;;  %s632_s18 = smov [#allocation2]   ;;  %s568_s22 = scalar_lea.hbm %s758_s1, 64 }
   0x2   :  { %s20_s19 = sshll.u32 %s632_s18, 4  ;;  %p569_p0 = scmp.ne.s32.totalorder %s758_s1, %s568_s22  ;;  %s21_s19 = int_to_ptr.vmem [resolvable:$true] %s20_s19 }
   0x3   :  { %p572_p1 = scmp.lt.u32.totalorder %s568_s22, %s758_s1 }
   0x5   :  { %p574_p2 = pnand %p572_p1, %p569_p0 }
   0x7   :  { %577 = shalt.err (!%p574_p2)
}
   0x8   :  { %s578_s27 = scalar_lea.vmem %s21_s19, 64  ;;  %p583_p4 = scmp.lt.s32.totalorder %s21_s19, %s21_s19 }
   0x9   :  { %p579_p3 = scmp.ne.s32.totalorder %s21_s19, %s578_s27  ;;  %p584_p5 = scmp.lt.s32.totalorder %s578_s27, %s578_s27 }
   0xb   :  { %p585_p6 = por %p584_p5, %p583_p4 }
   0xd   :  { %p586_p7 = pnand %p585_p6, %p579_p3 }
   0xf   :  { %589 = shalt.err (!%p586_p7)
}
  0x10   :  { %23 = dma.hbm_to_vmem [thread:$0]  %s758_s1, 64, %s21_s19, [#allocation3]  }
  0x11   :  { %620 = dma.done.wait [#allocation3], 64  }
  0x12   :  { %621 = vsyncadd [#allocation3], 4294967232  ;;  %v633_v0 = vmov 0.0   ;;  %vm634_vm0 = vmmov 0   ;;  %vm48_vm1 = vcmask 1042432   ;;  %vm44_vm2 = vcmask 23552  }
  0x13   :  { %510 = vmatprep.subr.mxu0 %v633_v0  ;;  %512 = vmatprep.mubr.msk.f32.mxu0 %vm634_vm0, %v633_v0  ;;  %v697_v1 = vld [vmem:[%s760_s3] sm:$0x3f]  ;;  %v34_v2 = vld [vmem:[#allocation2] sm:$0x7]  ;;  %vm129_vm3 = vcmask 1045504   ;;  %vm125_vm5 = vcmask 48128  }
  0x14   :  { %515 = vmatprep.subr.mxu1 %v633_v0  ;;  %517 = vmatprep.mubr.msk.f32.mxu1 %vm634_vm0, %v633_v0  ;;  %v33_v3 = vld [vmem:[%s757_s0] sm:$0xff]  ;;  %s712_s0 = smov 0   ;;  %v714_v13 = vmov 0.33333334  }
  0x15   :  { %511 = vmatpush3.msk.msra.mxu0 %vm48_vm1, %v34_v2  ;;  %v37_v4 = vld [vmem:[%s761_s4] sm:$0x3f] }
  0x16   :  { %513 = vmatmul.mubr.msk.f32.vlgmr.msra.gmra.mrb[0].mxu0 %vm44_vm2, %v33_v3  ;;  %516 = vmatpush3.msk.msra.mxu1 %vm129_vm3, %v37_v4  ;;  %v487_v5 = vld [vmem:[%s759_s2] ss:$0 sm:$0xff] }
  0xe9   :  { %v118_v6 = vpop.f32.mrb[0].mxu0 }
  0xea   :  { %v119_v7 = vadd.f32 %v487_v5, %v118_v6  ;;  %v514_v8 = vpop.f32.mrb[1].mxu0 }
  0xec   :  { %vm122_vm4 = vcmp.ge.f32.partialorder %v119_v7, 0.0  ;;  %v123_v9 = vmul.f32 0.1, %v119_v7 }
  0xee   :  { %v124_v10 = vsel %vm122_vm4, %v119_v7, %v123_v9 }
  0xef   :  { %518 = vmatmul.mubr.msk.f32.vlgmr.msra.gmra.mrb[0].mxu1 %vm125_vm5, %v124_v10 }
 0x1c2   :  { %v710_v11 = vpop.f32.mrb[0].mxu1 }
 0x1c3   :  { %v519_v12 = vpop.f32.mrb[1].mxu1 }
 0x1c4 LB: > { %v635_v14 = vmov 0.0   ;;  %vm636_vm6 = vmmov 0   ;;  %v637_v18 = vmov 0   ;;  %s638_s2 = smov 127   ;;  %s639_s3 = smov 126   ;;  %v640_v19 = vmov 3   ;;  %v630_v13 = vphi %v714_v13, %v763_v13   ;;  %s626_s0 = sphi %s712_s0, %s342_s0  }
 0x1c5   : > { %520 = vmatprep.subr.mxu0 %v635_v14  ;;  %522 = vmatprep.mubr.msk.f32.mxu0 %vm636_vm6, %v635_v14  ;;  %v313_v37 = vlaneseq  ;;  %s342_s0 = sadd.s32 1, %s626_s0  }
 0x1c6   : > { %521 = vmatpush3.msk.msra.mxu0 %vm129_vm3, %v697_v1  ;;  %562 = vset.pattern.permute.xlu1 %v637_v18  ;;  %p207_p8 = scmp.lt.s32.totalorder %s342_s0, 100 }
 0x1c7   : > { %523 = vmatmul.mubr.msk.f32.vlgmr.msra.gmra.mrb[0].mxu0 %vm125_vm5, %v630_v13  ;;  %564 = vset.pattern.permute.xlu0 %v640_v19  ;;  %v724_v38 = vand.u32 127, %v313_v37 }
 0x1c9   : > { %vm315_vm9 = vcmp.lt.s32.totalorder %v724_v38, 3 }
 0x29a   : > { %v285_v15 = vpop.f32.mrb[0].mxu0 }
 0x29b   : > { %v286_v16 = vadd.f32 %v285_v15, %v710_v11  ;;  %v524_v17 = vpop.f32.mrb[1].mxu0 }
 0x29d   : > { %290 = vrot.lane.b32.xlu0 %v286_v16, %s638_s2 }
 0x2a1   : > { %295 = vrot.lane.b32.xlu0 %v286_v16, %s639_s3 }
 0x30f   : > { %v291_v20 = vpop.permute.xlu0 %290 }
 0x310   : > { %v293_v21 = vmax.f32 %v286_v16, %v291_v20  ;;  %v294_v23 = vmin.f32 %v286_v16, %v291_v20 }
 0x313   : > { %v296_v22 = vpop.permute.xlu0 %295 }
 0x314   : > { %v300_v24 = vmin.f32 %v293_v21, %v296_v22  ;;  %v298_v25 = vmax.f32 %v293_v21, %v296_v22  ;;  %v299_v27 = vmin.f32 %v294_v23, %v296_v22 }
 0x316   : > { %v301_v26 = vmax.f32 %v294_v23, %v300_v24  ;;  %v494_v33 = vadd.f32 -1.0, %v298_v25 }
 0x318   : > { %v303_v28 = vadd.f32 %v301_v26, %v298_v25 }
 0x31a   : > { %v306_v29 = vadd.f32 %v303_v28, %v299_v27  ;;  %v495_v30 = vadd.f32 -1.0, %v303_v28 }
 0x31c   : > { %v305_v31 = vmul.f32 0.5, %v495_v30  ;;  %v496_v32 = vadd.f32 -1.0, %v306_v29 }
 0x31e   : > { %v308_v34 = vmul.f32 0.33333334, %v496_v32  ;;  %vm310_vm7 = vcmp.gt.f32.partialorder %v301_v26, %v305_v31 }
 0x31f   : > { %v311_v35 = vsel %vm310_vm7, %v305_v31, %v494_v33 }
 0x320   : > { %vm309_vm8 = vcmp.gt.f32.partialorder %v299_v27, %v308_v34 }
 0x321   : > { %v312_v36 = vsel %vm309_vm8, %v308_v34, %v311_v35 }
 0x322   : > { %320 = vperm.xlu1 %562, %v312_v36  }
 0x326   : > { %563 = vset.pattern.permute.xlu1 %v640_v19 }
 0x327   : > { %324 = vperm.xlu1 %563, %v312_v36  }
 0x3a1   : > { %v321_v39 = vpop.permute.xlu1 %320 }
 0x3a6   : > { %v325_v40 = vpop.permute.xlu1 %324 }
 0x3a7   : > { %v327_v41 = vsel %vm315_vm9, %v321_v39, %v325_v40 }
 0x3a8   : > { %v328_v42 = vsub.f32 %v286_v16, %v327_v41 }
 0x3aa   : > { %v329_v43 = vmax.f32 %v328_v42, 0.0  }
 0x3ac   : > { %v330_v44 = vsub.f32 %v329_v43, %v630_v13  ;;  %v763_v13 = vmov %v329_v43 }
 0x3ae   : > { %v331_v45 = vmul.f32 %v330_v44, %v330_v44 }
 0x3b0   : > { %v332_v46 = vsel %vm125_vm5, %v331_v45, 0.0 }
 0x3b1   : > { %333 = vadd.xlane.f32.xlu0 %v332_v46 }
 0x43e   : > { %v334_v47 = vpop.xlane.xlu0 %333 }
 0x43f   : > { %v335_v48 = vrot.slane %v334_v47, 4 }
 0x441   : > { %v336_v49 = vmax.f32 %v334_v47, %v335_v48 }
 0x443   : > { %v337_v50 = vrot.slane %v336_v49, 2 }
 0x445   : > { %v338_v51 = vmax.f32 %v336_v49, %v337_v50 }
 0x447   : > { %v339_v52 = vrot.slane %v338_v51, 1 }
 0x449   : > { %v340_v53 = vmax.f32 %v338_v51, %v339_v52 }
 0x44b   : > { %530 = vpush %v340_v53 }
 0x47c   : > { %s531_s4 = spop %530 }
 0x47d   : > { %p208_p9 = scmp.gt.f32.partialorder %s531_s4, 9.9999994e-11 }
 0x47f   : > { %p209_p10 = pnand %p208_p9, %p207_p8 }
 0x480   :  { %525 = vmatprep.subr.mxu0 (%p209_p10), %v633_v0  ;;  %527 = vmatprep.mubr.msk.f32.mxu0 (%p209_p10), %vm634_vm0, %v633_v0  ;;  %s641_s12 = smov (%p209_p10), 127   ;;  %v642_v57 = vmov (%p209_p10), 0   ;;  %s643_s13 = smov (%p209_p10), 126   ;;  %v644_v58 = vmov (%p209_p10), 3  }
 0x481   :  { %212 = sbr.rel (!%p209_p10) target bundleno = 452 (0x1c4), region = 51  ;;  %526 = vmatpush3.msk.msra.mxu0 (%p209_p10), %vm129_vm3, %v697_v1  ;;  %565 = vset.pattern.permute.xlu1 (%p209_p10), %v642_v57  ;;  %s645_s14 = smov (%p209_p10), [#allocation5]  }
 0x482   :  { %528 = vmatmul.mubr.msk.f32.vlgmr.msra.gmra.mrb[0].mxu0 (%p209_p10), %vm125_vm5, %v329_v43  ;;  %567 = vset.pattern.permute.xlu0 (%p209_p10), %v644_v58  ;;  %s467_s15 = sshll.u32 (%p209_p10), %s645_s14, 4  ;;  %s468_s15 = int_to_ptr.vmem [resolvable:$true] %s467_s15 }
 0x483   :  { %s590_s16 = scalar_lea.vmem (%p209_p10), %s468_s15, 128  ;;  %p595_p12 = scmp.lt.s32.totalorder (%p209_p10), %s468_s15, %s468_s15 }
 0x484   :  { %p591_p11 = scmp.ne.s32.totalorder (%p209_p10), %s468_s15, %s590_s16  ;;  %p596_p13 = scmp.lt.s32.totalorder (%p209_p10), %s590_s16, %s590_s16 }
 0x486   :  { %p597_p0 = por (%p209_p10), %p596_p13, %p595_p12 }
 0x488   :  { %p598_p1 = pnand %p597_p0, %p591_p11 }
 0x555   :  { %v415_v54 = vpop.f32.mrb[0].mxu0 }
 0x556   :  { %v416_v55 = vadd.f32 %v415_v54, %v710_v11  ;;  %v529_v56 = vpop.f32.mrb[1].mxu0 }
 0x558   :  { %420 = vrot.lane.b32.xlu0 %v416_v55, %s641_s12 }
 0x55c   :  { %425 = vrot.lane.b32.xlu0 %v416_v55, %s643_s13 }
 0x5ca   :  { %v421_v59 = vpop.permute.xlu0 %420 }
 0x5cb   :  { %v423_v60 = vmax.f32 %v416_v55, %v421_v59  ;;  %v424_v62 = vmin.f32 %v416_v55, %v421_v59 }
 0x5ce   :  { %v426_v61 = vpop.permute.xlu0 %425 }
 0x5cf   :  { %v430_v63 = vmin.f32 %v423_v60, %v426_v61  ;;  %v428_v0 = vmax.f32 %v423_v60, %v426_v61  ;;  %v429_v2 = vmin.f32 %v424_v62, %v426_v61 }
 0x5d1   :  { %v431_v1 = vmax.f32 %v424_v62, %v430_v63  ;;  %v499_v8 = vadd.f32 -1.0, %v428_v0 }
 0x5d3   :  { %v433_v3 = vadd.f32 %v431_v1, %v428_v0 }
 0x5d5   :  { %v500_v4 = vadd.f32 -1.0, %v433_v3  ;;  %v436_v5 = vadd.f32 %v433_v3, %v429_v2 }
 0x5d7   :  { %v435_v6 = vmul.f32 0.5, %v500_v4  ;;  %v501_v7 = vadd.f32 -1.0, %v436_v5 }
 0x5d9   :  { %v438_v9 = vmul.f32 0.33333334, %v501_v7  ;;  %vm440_vm10 = vcmp.gt.f32.partialorder %v431_v1, %v435_v6 }
 0x5da   :  { %v441_v10 = vsel %vm440_vm10, %v435_v6, %v499_v8 }
 0x5db   :  { %vm439_vm11 = vcmp.gt.f32.partialorder %v429_v2, %v438_v9 }
 0x5dc   :  { %v442_v11 = vsel %vm439_vm11, %v438_v9, %v441_v10 }
 0x5dd   :  { %450 = vperm.xlu1 %565, %v442_v11  }
 0x5e1   :  { %566 = vset.pattern.permute.xlu1 %v644_v58 }
 0x5e2   :  { %454 = vperm.xlu1 %566, %v442_v11  }
 0x65c   :  { %v451_v12 = vpop.permute.xlu1 %450 }
 0x661   :  { %v455_v13 = vpop.permute.xlu1 %454 }
 0x662   :  { %v457_v14 = vsel %vm315_vm9, %v451_v12, %v455_v13 }
 0x663   :  { %v458_v15 = vsub.f32 %v416_v55, %v457_v14 }
 0x665   :  { %v459_v16 = vmax.f32 %v458_v15, 0.0 }
 0x667   :  { %460 = vst.msk [vmem:[#allocation5] sm:$0xff] %vm125_vm5, %v459_v16 }
 0x668   :  { %601 = shalt.err (!%p598_p1)
}
 0x669   :  { %s602_s19 = scalar_lea.hbm %s762_s5, 128 }
 0x66a   :  { %p603_p2 = scmp.ne.s32.totalorder %s762_s5, %s602_s19  ;;  %p606_p3 = scmp.lt.u32.totalorder %s602_s19, %s762_s5 }
 0x66c   :  { %p608_p4 = pnand %p606_p3, %p603_p2 }
 0x66e   :  { %611 = shalt.err (!%p608_p4)
}
 0x66f   :  { %470 = dma.vmem_to_hbm [thread:$0]  %s468_s15, 128, %s762_s5, [#allocation4]  }
 0x670   :  { %622 = dma.done.wait [#allocation4], 128  }
 0x671   :  { %623 = vsyncadd [#allocation4], 4294967168 }
 0x672   :  { %474 = vsyncpa [#allocation3], 1 }
 0x673   :  { %475 = vsyncpa [#allocation4], 1 }

</bundles_post_ra>
